<compile_context>
chip_gen: v7x
topology: tpu7x:2x2x1
jax: 0.10.0
libtpu: 0.0.40
codegen_flags: <defaults>
</compile_context>

<pallas_src>
import functools

import jax
import jax.numpy as jnp
import numpy as np
from jax.experimental import pallas as pl
from jax.experimental.pallas import tpu as pltpu

_LANE = 128
_SUBLANE = 8


def _round_up(v, m):
    return (v + m - 1) // m * m


def _pad_nodes(n):
    # Large graphs: pad N to a multiple of 512 so the K tile of the A stream
    # can always be >= 512 (HBM-bound regime).
    if n >= 1024:
        return _round_up(n, 512)
    return _round_up(n, _LANE)


def _choose_k_tile(dim_pad):
    # Largest contraction tile that divides the padded dim (amortizes the
    # ~0.35us per-grid-step overhead; kernel is HBM-bound).
    for cand in (1024, 512, 256, 128):
        if dim_pad % cand == 0:
            return cand
    return _LANE


def _choose_row_tile(n_pad):
    # Target ~256 rows, but keep >= 2 row tiles whenever possible so the
    # "parallel" row axis shards across v7x's two TensorCores.
    for cand in (256, 128):
        if n_pad % cand == 0 and n_pad // cand >= 2:
            return cand
    return n_pad  # degenerate single-tile case (n_pad == 128)


def _vmem_limit_bytes(per_step_bytes):
    # Double-buffered working set plus headroom; never below the smallest
    # default scoped limit (16 MiB on v5e) and capped well under v7x's 64 MiB
    # physical VMEM.
    return int(min(max(2 * per_step_bytes, 16 << 20), 48 << 20))


# ----------------------------------------------------------------------------
# Kernel 1: XW = X @ W, F(contraction)-tiled with an f32 accumulator
# ----------------------------------------------------------------------------
def _xw_kernel(x_ref, w_ref, xw_ref, acc_ref):
    kf = pl.program_id(1)

    @pl.when(kf == 0)
    def _init():
        acc_ref[...] = jnp.zeros_like(acc_ref)

    acc_ref[...] += jnp.dot(
        x_ref[...], w_ref[...], preferred_element_type=jnp.float32
    )

    @pl.when(kf == pl.num_programs(1) - 1)
    def _finalize():
        xw_ref[...] = acc_ref[...].astype(xw_ref.dtype)


# ----------------------------------------------------------------------------
# Kernel 2: tiled hidden = relu(A_norm @ XW + b) with fused mean-pool partials
#           psum[i] = P[:, row_tile_i] @ hidden_tile_i
# ----------------------------------------------------------------------------
def _gcn_pool_kernel(a_ref, xw_ref, b_ref, p_ref, hidden_ref, psum_ref, acc_ref):
    k = pl.program_id(1)

    @pl.when(k == 0)
    def _init():
        acc_ref[...] = jnp.zeros_like(acc_ref)

    acc_ref[...] += jnp.dot(
        a_ref[...], xw_ref[...], preferred_element_type=jnp.float32
    )

    @pl.when(k == pl.num_programs(1) - 1)
    def _finalize():
        h = jnp.maximum(acc_ref[...] + b_ref[...], 0.0).astype(jnp.bfloat16)
        hidden_ref[...] = h
        psum_ref[0] = jnp.dot(p_ref[...], h, preferred_element_type=jnp.float32)


# ----------------------------------------------------------------------------
# Pallas-call wrappers
# ----------------------------------------------------------------------------
def _forward_core(a_p, x, w, b, p_p):
    """a_p: (n_pad, n_pad) bf16 normalized adjacency (already padded).
       p_p: (g_pad, n_pad) bf16 mean-pool matrix (already padded).
       Returns hidden_p (n_pad, h_pad) bf16, summary_pad (g_pad, h_pad) f32."""
    n_pad = a_p.shape[0]
    g_pad = p_p.shape[0]
    n, f = x.shape
    h = w.shape[1]
    f_pad = _round_up(f, _LANE)
    h_pad = _round_up(h, _LANE)

    tm = _choose_row_tile(n_pad)
    tk = _choose_k_tile(n_pad)
    tf = _choose_k_tile(f_pad)
    ni = n_pad // tm
    nk = n_pad // tk
    nf = f_pad // tf

    x_p = jnp.pad(x, ((0, n_pad - n), (0, f_pad - f))).astype(jnp.bfloat16)
    w_p = jnp.pad(w, ((0, f_pad - f), (0, h_pad - h))).astype(jnp.bfloat16)
    b_p = jnp.pad(b, ((0, 0), (0, h_pad - h))).astype(jnp.float32)

    # --- XW = X @ W ----------------------------------------------------------
    xw_step_bytes = (
        2 * (tm * tf * 2 + tf * h_pad * 2 + tm * h_pad * 2) + tm * h_pad * 4
    )
    xw = pl.pallas_call(
        _xw_kernel,
        out_shape=jax.ShapeDtypeStruct((n_pad, h_pad), jnp.bfloat16),
        grid_spec=pltpu.PrefetchScalarGridSpec(
            num_scalar_prefetch=0,
            grid=(ni, nf),
            in_specs=[
                pl.BlockSpec((tm, tf), lambda i, kf: (i, kf)),
                pl.BlockSpec((tf, h_pad), lambda i, kf: (kf, 0)),
            ],
            out_specs=pl.BlockSpec((tm, h_pad), lambda i, kf: (i, 0)),
            scratch_shapes=[pltpu.VMEM((tm, h_pad), jnp.float32)],
        ),
        compiler_params=pltpu.CompilerParams(
            dimension_semantics=("parallel", "arbitrary"),
            vmem_limit_bytes=_vmem_limit_bytes(xw_step_bytes),
        ),
        cost_estimate=pl.CostEstimate(
            flops=2 * n_pad * f_pad * h_pad,
            transcendentals=0,
            bytes_accessed=2 * (n_pad * f_pad + ni * f_pad * h_pad + n_pad * h_pad),
        ),
    )(x_p, w_p)

    # --- hidden = relu(A_norm @ XW + b), fused mean-pool partials -------------
    gcn_step_bytes = (
        2 * (tm * tk * 2 + tk * h_pad * 2 + h_pad * 4 + g_pad * tm * 2
             + tm * h_pad * 2 + g_pad * h_pad * 4)
        + tm * h_pad * 4
    )
    hidden_p, psum = pl.pallas_call(
        _gcn_pool_kernel,
        out_shape=(
            jax.ShapeDtypeStruct((n_pad, h_pad), jnp.bfloat16),
            jax.ShapeDtypeStruct((ni, g_pad, h_pad), jnp.float32),
        ),
        grid_spec=pltpu.PrefetchScalarGridSpec(
            num_scalar_prefetch=0,
            grid=(ni, nk),
            in_specs=[
                pl.BlockSpec((tm, tk), lambda i, k: (i, k)),       # A_norm tile
                pl.BlockSpec((tk, h_pad), lambda i, k: (k, 0)),    # XW k-slab
                pl.BlockSpec((1, h_pad), lambda i, k: (0, 0)),     # bias
                pl.BlockSpec((g_pad, tm), lambda i, k: (0, i)),    # P columns
            ],
            out_specs=(
                pl.BlockSpec((tm, h_pad), lambda i, k: (i, 0)),        # hidden tile
                pl.BlockSpec((1, g_pad, h_pad), lambda i, k: (i, 0, 0)),  # psum
            ),
            scratch_shapes=[pltpu.VMEM((tm, h_pad), jnp.float32)],
        ),
        compiler_params=pltpu.CompilerParams(
            dimension_semantics=("parallel", "arbitrary"),
            vmem_limit_bytes=_vmem_limit_bytes(gcn_step_bytes),
        ),
        cost_estimate=pl.CostEstimate(
            flops=2 * n_pad * n_pad * h_pad + 2 * g_pad * n_pad * h_pad,
            transcendentals=0,
            bytes_accessed=(
                2 * n_pad * n_pad + 2 * ni * n_pad * h_pad + 2 * g_pad * n_pad
                + 4 * h_pad + 2 * n_pad * h_pad + 4 * ni * g_pad * h_pad
            ),
        ),
    )(a_p, xw, b_p, p_p)

    summary_pad = jnp.sum(psum, axis=0)
    return hidden_p, summary_pad


# ----------------------------------------------------------------------------
# Graph preprocessing (built directly padded + bf16: one write of the N^2 array)
# ----------------------------------------------------------------------------
def _build_normalized_adjacency_padded(edge_index, num_nodes, n_pad):
    """D^-1/2 (A + I) D^-1/2 built at (n_pad, n_pad); bf16 cast fused into the
    final normalization scaling. Padded rows/cols are exactly zero."""
    src, dst = edge_index[0], edge_index[1]
    adj = jnp.zeros((n_pad, n_pad), jnp.float32)
    adj = adj.at[dst, src].set(1.0)
    adj = adj.at[src, dst].set(1.0)                        # symmetrize
    diag = jnp.arange(num_nodes)
    adj = adj.at[diag, diag].add(1.0)                      # self loops (real nodes)
    deg = jnp.sum(adj, axis=1)
    d_inv_sqrt = jnp.where(deg > 0.0, 1.0 / jnp.sqrt(jnp.maximum(deg, 1.0)), 0.0)
    return (adj * d_inv_sqrt[:, None] * d_inv_sqrt[None, :]).astype(jnp.bfloat16)


def _build_pool_matrix_padded(batch, num_graphs, num_nodes, n_pad, g_pad):
    """P[g, n] = 1/count_g if batch[n] == g else 0, built padded (g_pad, n_pad).
    Padded node columns are zero (padded hidden rows never pollute summary)."""
    node_valid = jnp.arange(n_pad) < num_nodes
    batch_p = jnp.where(
        node_valid,
        jnp.pad(batch.astype(jnp.int32), (0, n_pad - num_nodes)),
        -1,
    )
    one_hot = (batch_p[None, :] == jnp.arange(g_pad)[:, None]).astype(jnp.float32)
    counts = jnp.maximum(jnp.sum(one_hot, axis=1, keepdims=True), 1.0)
    return (one_hot / counts).astype(jnp.bfloat16)


@functools.partial(jax.jit, static_argnames=("num_graphs",))
def _subgraph_forward(x, edge_index, batch, index, w, b, *, num_graphs):
    n = x.shape[0]
    h = w.shape[1]
    n_pad = _pad_nodes(n)
    g_pad = max(_round_up(num_graphs, _SUBLANE), _SUBLANE)
    a_p = _build_normalized_adjacency_padded(edge_index, n, n_pad)
    p_p = _build_pool_matrix_padded(batch, num_graphs, n, n_pad, g_pad)
    hidden_p, summary_pad = _forward_core(a_p, x, w, b, p_p)
    # Gather the requested rows straight from the padded kernel output; never
    # materialize a full N x H copy first.  (Indices are < n, so the non-zero
    # padded rows of hidden_p are never observed.)
    z = hidden_p[index][:, :h].astype(jnp.float32)
    summary = summary_pad[:num_graphs, :h]
    return z, summary


@jax.jit
def _subgraph_forward_hidden(x, edge_index, w, b):
    n = x.shape[0]
    h = w.shape[1]
    n_pad = _pad_nodes(n)
    a_p = _build_normalized_adjacency_padded(edge_index, n, n_pad)
    p_p = jnp.zeros((_SUBLANE, n_pad), jnp.bfloat16)  # pooling unused when index is None
    hidden_p, _ = _forward_core(a_p, x, w, b, p_p)
    return hidden_p[:n, :h].astype(jnp.float32)


# ----------------------------------------------------------------------------
# SubgraphModel-like wrapper
# ----------------------------------------------------------------------------
class SubgraphModelPallas:
    """JAX/Pallas re-implementation of SubgraphModel.forward."""

    def __init__(self, in_channels, hidden_channels, num_proj_hidden=256, seed=0):
        key = jax.random.PRNGKey(seed)
        k_w, k_b, k_f1, k_f2 = jax.random.split(key, 4)
        # GCN encoder parameters (the injected `encoder` made concrete).
        self.w = (jax.random.normal(k_w, (in_channels, hidden_channels), jnp.float32)
                  / np.sqrt(in_channels)).astype(jnp.float32)
        self.b = 0.01 * jax.random.normal(k_b, (1, hidden_channels), jnp.float32)
        # fc1/fc2 exist in the PyTorch __init__ (used only by projection()).
        self.fc1_w = (jax.random.normal(k_f1, (hidden_channels, num_proj_hidden),
                                        jnp.float32) / np.sqrt(hidden_channels))
        self.fc2_w = (jax.random.normal(k_f2, (num_proj_hidden, hidden_channels),
                                        jnp.float32) / np.sqrt(num_proj_hidden))
        # TODO(synk): loss()/loss_grace()/test() paths (randperm, MarginRankingLoss,
        # sklearn LogisticRegression) are training/eval utilities, not forward().

    def forward(self, x, edge_index, batch=None, index=None, num_graphs=None):
        n = x.shape[0]
        if index is None:
            return _subgraph_forward_hidden(x, edge_index, self.w, self.b)
        if batch is None:
            batch = jnp.zeros((n,), jnp.int32)
        if num_graphs is None:
            # Fallback only: callers should pass num_graphs as a static int to
            # avoid a device->host sync + recompile per distinct graph count.
            num_graphs = int(jax.device_get(jnp.max(batch))) + 1
        return _subgraph_forward(
            x, edge_index, batch, index, self.w, self.b, num_graphs=num_graphs)


# ----------------------------------------------------------------------------
# Pure-JAX (f32, unpadded) reference for a correctness spot-check
# ----------------------------------------------------------------------------
def _reference_forward(model, x, edge_index, batch, index, num_graphs):
    n = x.shape[0]
    src, dst = edge_index[0], edge_index[1]
    adj = jnp.zeros((n, n), jnp.float32)
    adj = adj.at[dst, src].set(1.0)
    adj = adj.at[src, dst].set(1.0)
    adj = adj + jnp.eye(n, dtype=jnp.float32)
    deg = jnp.sum(adj, axis=1)
    dis = 1.0 / jnp.sqrt(jnp.maximum(deg, 1.0))
    a_norm = adj * dis[:, None] * dis[None, :]
    one_hot = (batch[None, :] == jnp.arange(num_graphs)[:, None]).astype(jnp.float32)
    counts = jnp.maximum(jnp.sum(one_hot, axis=1, keepdims=True), 1.0)
    pool_mat = one_hot / counts
    hidden = jnp.maximum(a_norm @ (x @ model.w) + model.b, 0.0)
    summary = pool_mat @ hidden
    return hidden[index], summary


if __name__ == "__main__":
    key = jax.random.PRNGKey(0)
    k_x, k_e, k_i = jax.random.split(key, 3)

    N, F_IN, HIDDEN, G, E = 256, 128, 128, 2, 1024

    x = jax.random.normal(k_x, (N, F_IN), jnp.float32)
    edge_index = jax.random.randint(k_e, (2, E), 0, N, dtype=jnp.int32)
    batch = jnp.concatenate([jnp.zeros((N // 2,), jnp.int32),
                             jnp.ones((N - N // 2,), jnp.int32)])
    index = jax.random.permutation(k_i, N)[:8]

    model = SubgraphModelPallas(in_channels=F_IN, hidden_channels=HIDDEN, seed=0)

    z, summary = model.forward(x, edge_index, batch=batch, index=index, num_graphs=G)
    z, summary = jax.block_until_ready((z, summary))

    z_ref, summary_ref = _reference_forward(model, x, edge_index, batch, index, G)
    assert z.shape == (8, HIDDEN) and summary.shape == (G, HIDDEN)
    # bf16 kernel operands + bf16 hidden writeback with f32 accumulation,
    # compared against a pure-f32 reference.
    np.testing.assert_allclose(np.asarray(z), np.asarray(z_ref),
                               rtol=3e-2, atol=3e-2)
    np.testing.assert_allclose(np.asarray(summary), np.asarray(summary_ref),
                               rtol=3e-2, atol=3e-2)

    print("KERNEL_OK")
</pallas_src>

<mosaic_0001>
module attributes {stable_mosaic.version = 11 : i64} {
  func.func private @main(%arg0: i32) attributes {dimension_semantics = [#tpu.dimension_semantics<core_parallel>], iteration_bounds = array<i64: 2>, tpu.core_type = #tpu.core_type<sc_scalar_subcore>, window_params = []} {
    return
  }
}

module attributes {stable_mosaic.version = 11 : i64} {
  func.func private @main(%arg0: i32) attributes {dimension_semantics = [#tpu.dimension_semantics<core_parallel>], iteration_bounds = array<i64: 2>, tpu.core_type = #tpu.core_type<sc_scalar_subcore>, window_params = []} {
    return
  }
}

module attributes {stable_mosaic.version = 11 : i64} {
  func.func @_xw_kernel(%arg0: i32, %arg1: i32, %arg2: memref<128x128xbf16, #tpu.memory_space<vmem>>, %arg3: memref<128x128xbf16, #tpu.memory_space<vmem>>, %arg4: memref<128x128xbf16, #tpu.memory_space<vmem>>, %arg5: memref<128x128xf32, #tpu.memory_space<vmem>>) attributes {dimension_semantics = [#tpu.dimension_semantics<parallel>, #tpu.dimension_semantics<arbitrary>], iteration_bounds = array<i64: 2, 1>, scalar_prefetch = 0 : i64, scratch_operands = 1 : i64, tpu.core_type = #tpu.core_type<tc>, window_params = [{transform_indices = @transform_0, window_bounds = array<i64: 128, 128>}, {transform_indices = @transform_1, window_bounds = array<i64: 128, 128>}, {transform_indices = @transform_2, window_bounds = array<i64: 128, 128>}]} {
    %c0_i32 = arith.constant 0 : i32
    %0 = arith.cmpi eq, %arg1, %c0_i32 : i32
    %1 = arith.extui %0 : i1 to i32
    %c0_i32_0 = arith.constant 0 : i32
    %2 = arith.cmpi ne, %1, %c0_i32_0 : i32
    scf.if %2 {
      %cst_10 = arith.constant 0.000000e+00 : f32
      %12 = vector.broadcast %cst_10 : f32 to vector<128x128xf32>
      %c0_11 = arith.constant 0 : index
      %c0_12 = arith.constant 0 : index
      %13 = vector.load %arg5[%c0_11, %c0_12] : memref<128x128xf32, #tpu.memory_space<vmem>>, vector<128x128xf32>
      tpu.vector_store %arg5[%c0_11, %c0_12], %12 {strides = array<i32>} : memref<128x128xf32, #tpu.memory_space<vmem>>, vector<128x128xf32>,
    } else {
    }
    %c0 = arith.constant 0 : index
    %c0_1 = arith.constant 0 : index
    %3 = vector.load %arg5[%c0, %c0_1] : memref<128x128xf32, #tpu.memory_space<vmem>>, vector<128x128xf32>
    %c0_2 = arith.constant 0 : index
    %c0_3 = arith.constant 0 : index
    %4 = vector.load %arg2[%c0_2, %c0_3] : memref<128x128xbf16, #tpu.memory_space<vmem>>, vector<128x128xbf16>
    %c0_4 = arith.constant 0 : index
    %c0_5 = arith.constant 0 : index
    %5 = vector.load %arg3[%c0_4, %c0_5] : memref<128x128xbf16, #tpu.memory_space<vmem>>, vector<128x128xbf16>
    %cst = arith.constant dense<0.000000e+00> : vector<128x128xf32>
    %6 = tpu.matmul %4, %5, %cst {dimension_numbers = #tpu.dot_dimension_numbers<[1], [0], [0], [1], [0, 0, 1, 1], [], []>} : vector<128x128xbf16>, vector<128x128xbf16>, vector<128x128xf32> -> vector<128x128xf32>
    %7 = arith.addf %3, %6 : vector<128x128xf32>
    %c0_6 = arith.constant 0 : index
    %c0_7 = arith.constant 0 : index
    %8 = vector.load %arg5[%c0_6, %c0_7] : memref<128x128xf32, #tpu.memory_space<vmem>>, vector<128x128xf32>
    tpu.vector_store %arg5[%c0_6, %c0_7], %7 {strides = array<i32>} : memref<128x128xf32, #tpu.memory_space<vmem>>, vector<128x128xf32>,
    %c0_i32_8 = arith.constant 0 : i32
    %9 = arith.cmpi eq, %arg1, %c0_i32_8 : i32
    %10 = arith.extui %9 : i1 to i32
    %c0_i32_9 = arith.constant 0 : i32
    %11 = arith.cmpi ne, %10, %c0_i32_9 : i32
    scf.if %11 {
      %c0_10 = arith.constant 0 : index
      %c0_11 = arith.constant 0 : index
      %12 = vector.load %arg5[%c0_10, %c0_11] : memref<128x128xf32, #tpu.memory_space<vmem>>, vector<128x128xf32>
      %13 = arith.truncf %12 : vector<128x128xf32> to vector<128x128xbf16>
      %c0_12 = arith.constant 0 : index
      %c0_13 = arith.constant 0 : index
      %14 = vector.load %arg4[%c0_12, %c0_13] : memref<128x128xbf16, #tpu.memory_space<vmem>>, vector<128x128xbf16>
      tpu.vector_store %arg4[%c0_12, %c0_13], %13 {strides = array<i32>} : memref<128x128xbf16, #tpu.memory_space<vmem>>, vector<128x128xbf16>,
    } else {
    }
    return
  }
  func.func @transform_0(%arg0: i32, %arg1: i32) -> (i32, i32) {
    %c0_i32 = arith.constant 0 : i32
    return %arg0, %arg1 : i32, i32
  }
  func.func @transform_1(%arg0: i32, %arg1: i32) -> (i32, i32) {
    %c0_i32 = arith.constant 0 : i32
    %c0_i32_0 = arith.constant 0 : i32
    return %arg1, %c0_i32 : i32, i32
  }
  func.func @transform_2(%arg0: i32, %arg1: i32) -> (i32, i32) {
    %c0_i32 = arith.constant 0 : i32
    %c0_i32_0 = arith.constant 0 : i32
    return %arg0, %c0_i32 : i32, i32
  }
}

module attributes {stable_mosaic.version = 11 : i64} {
  func.func @_gcn_pool_kernel(%arg0: i32, %arg1: i32, %arg2: memref<128x256xbf16, #tpu.memory_space<vmem>>, %arg3: memref<256x128xbf16, #tpu.memory_space<vmem>>, %arg4: memref<1x128xf32, #tpu.memory_space<vmem>>, %arg5: memref<8x128xbf16, #tpu.memory_space<vmem>>, %arg6: memref<128x128xbf16, #tpu.memory_space<vmem>>, %arg7: memref<1x8x128xf32, #tpu.memory_space<vmem>>, %arg8: memref<128x128xf32, #tpu.memory_space<vmem>>) attributes {dimension_semantics = [#tpu.dimension_semantics<parallel>, #tpu.dimension_semantics<arbitrary>], iteration_bounds = array<i64: 2, 1>, scalar_prefetch = 0 : i64, scratch_operands = 1 : i64, tpu.core_type = #tpu.core_type<tc>, window_params = [{transform_indices = @transform_0, window_bounds = array<i64: 128, 256>}, {transform_indices = @transform_1, window_bounds = array<i64: 256, 128>}, {pipeline_mode = #tpu.pipeline_mode<synchronous>, transform_indices = @transform_2, window_bounds = array<i64: 1, 128>}, {transform_indices = @transform_3, window_bounds = array<i64: 8, 128>}, {transform_indices = @transform_4, window_bounds = array<i64: 128, 128>}, {transform_indices = @transform_5, window_bounds = array<i64: 1, 8, 128>}]} {
    %c0_i32 = arith.constant 0 : i32
    %0 = arith.cmpi eq, %arg1, %c0_i32 : i32
    %1 = arith.extui %0 : i1 to i32
    %c0_i32_0 = arith.constant 0 : i32
    %2 = arith.cmpi ne, %1, %c0_i32_0 : i32
    scf.if %2 {
      %cst_10 = arith.constant 0.000000e+00 : f32
      %12 = vector.broadcast %cst_10 : f32 to vector<128x128xf32>
      %c0_11 = arith.constant 0 : index
      %c0_12 = arith.constant 0 : index
      %13 = vector.load %arg8[%c0_11, %c0_12] : memref<128x128xf32, #tpu.memory_space<vmem>>, vector<128x128xf32>
      tpu.vector_store %arg8[%c0_11, %c0_12], %12 {strides = array<i32>} : memref<128x128xf32, #tpu.memory_space<vmem>>, vector<128x128xf32>,
    } else {
    }
    %c0 = arith.constant 0 : index
    %c0_1 = arith.constant 0 : index
    %3 = vector.load %arg8[%c0, %c0_1] : memref<128x128xf32, #tpu.memory_space<vmem>>, vector<128x128xf32>
    %c0_2 = arith.constant 0 : index
    %c0_3 = arith.constant 0 : index
    %4 = vector.load %arg2[%c0_2, %c0_3] : memref<128x256xbf16, #tpu.memory_space<vmem>>, vector<128x256xbf16>
    %c0_4 = arith.constant 0 : index
    %c0_5 = arith.constant 0 : index
    %5 = vector.load %arg3[%c0_4, %c0_5] : memref<256x128xbf16, #tpu.memory_space<vmem>>, vector<256x128xbf16>
    %cst = arith.constant dense<0.000000e+00> : vector<128x128xf32>
    %6 = tpu.matmul %4, %5, %cst {dimension_numbers = #tpu.dot_dimension_numbers<[1], [0], [0], [1], [0, 0, 1, 1], [], []>} : vector<128x256xbf16>, vector<256x128xbf16>, vector<128x128xf32> -> vector<128x128xf32>
    %7 = arith.addf %3, %6 : vector<128x128xf32>
    %c0_6 = arith.constant 0 : index
    %c0_7 = arith.constant 0 : index
    %8 = vector.load %arg8[%c0_6, %c0_7] : memref<128x128xf32, #tpu.memory_space<vmem>>, vector<128x128xf32>
    tpu.vector_store %arg8[%c0_6, %c0_7], %7 {strides = array<i32>} : memref<128x128xf32, #tpu.memory_space<vmem>>, vector<128x128xf32>,
    %c0_i32_8 = arith.constant 0 : i32
    %9 = arith.cmpi eq, %arg1, %c0_i32_8 : i32
    %10 = arith.extui %9 : i1 to i32
    %c0_i32_9 = arith.constant 0 : i32
    %11 = arith.cmpi ne, %10, %c0_i32_9 : i32
    scf.if %11 {
      %c0_10 = arith.constant 0 : index
      %c0_11 = arith.constant 0 : index
      %12 = vector.load %arg8[%c0_10, %c0_11] : memref<128x128xf32, #tpu.memory_space<vmem>>, vector<128x128xf32>
      %c0_12 = arith.constant 0 : index
      %c0_13 = arith.constant 0 : index
      %13 = vector.load %arg4[%c0_12, %c0_13] : memref<1x128xf32, #tpu.memory_space<vmem>>, vector<1x128xf32>
      %14 = vector.broadcast %13 : vector<1x128xf32> to vector<128x128xf32>
      %15 = arith.addf %12, %14 : vector<128x128xf32>
      %cst_14 = arith.constant 0.000000e+00 : f32
      %16 = vector.broadcast %cst_14 : f32 to vector<128x128xf32>
      %17 = arith.maximumf %15, %16 : vector<128x128xf32>
      %18 = arith.truncf %17 : vector<128x128xf32> to vector<128x128xbf16>
      %c0_15 = arith.constant 0 : index
      %c0_16 = arith.constant 0 : index
      %19 = vector.load %arg6[%c0_15, %c0_16] : memref<128x128xbf16, #tpu.memory_space<vmem>>, vector<128x128xbf16>
      tpu.vector_store %arg6[%c0_15, %c0_16], %18 {strides = array<i32>} : memref<128x128xbf16, #tpu.memory_space<vmem>>, vector<128x128xbf16>,
      %c0_17 = arith.constant 0 : index
      %c0_18 = arith.constant 0 : index
      %20 = vector.load %arg5[%c0_17, %c0_18] : memref<8x128xbf16, #tpu.memory_space<vmem>>, vector<8x128xbf16>
      %cst_19 = arith.constant dense<0.000000e+00> : vector<8x128xf32>
      %21 = tpu.matmul %20, %18, %cst_19 {dimension_numbers = #tpu.dot_dimension_numbers<[1], [0], [0], [1], [0, 0, 1, 1], [], []>} : vector<8x128xbf16>, vector<128x128xbf16>, vector<8x128xf32> -> vector<8x128xf32>
      %c0_20 = arith.constant 0 : index
      %c0_21 = arith.constant 0 : index
      %c0_22 = arith.constant 0 : index
      %22 = vector.load %arg7[%c0_20, %c0_21, %c0_22] : memref<1x8x128xf32, #tpu.memory_space<vmem>>, vector<1x8x128xf32>
      %23 = vector.shape_cast %22 : vector<1x8x128xf32> to vector<8x128xf32>
      %24 = vector.shape_cast %21 : vector<8x128xf32> to vector<1x8x128xf32>
      tpu.vector_store %arg7[%c0_20, %c0_21, %c0_22], %24 {strides = array<i32>} : memref<1x8x128xf32, #tpu.memory_space<vmem>>, vector<1x8x128xf32>,
    } else {
    }
    return
  }
  func.func @transform_0(%arg0: i32, %arg1: i32) -> (i32, i32) {
    %c0_i32 = arith.constant 0 : i32
    return %arg0, %arg1 : i32, i32
  }
  func.func @transform_1(%arg0: i32, %arg1: i32) -> (i32, i32) {
    %c0_i32 = arith.constant 0 : i32
    %c0_i32_0 = arith.constant 0 : i32
    return %arg1, %c0_i32 : i32, i32
  }
  func.func @transform_2(%arg0: i32, %arg1: i32) -> (i32, i32) {
    %c0_i32 = arith.constant 0 : i32
    %c0_i32_0 = arith.constant 0 : i32
    %c0_i32_1 = arith.constant 0 : i32
    return %c0_i32, %c0_i32_0 : i32, i32
  }
  func.func @transform_3(%arg0: i32, %arg1: i32) -> (i32, i32) {
    %c0_i32 = arith.constant 0 : i32
    %c0_i32_0 = arith.constant 0 : i32
    return %c0_i32, %arg0 : i32, i32
  }
  func.func @transform_4(%arg0: i32, %arg1: i32) -> (i32, i32) {
    %c0_i32 = arith.constant 0 : i32
    %c0_i32_0 = arith.constant 0 : i32
    return %arg0, %c0_i32 : i32, i32
  }
  func.func @transform_5(%arg0: i32, %arg1: i32) -> (i32, i32, i32) {
    %c0_i32 = arith.constant 0 : i32
    %c0_i32_0 = arith.constant 0 : i32
    %c0_i32_1 = arith.constant 0 : i32
    return %arg0, %c0_i32, %c0_i32_0 : i32, i32, i32
  }
}

</mosaic_0001>

<bundles_post_ra>
// kernel: _subgraph_forward.2
= control target key start
LH: loop header
LB: loop body
LE: loop exit
PB: predicated region body
PF: predicated region fallthrough
CT: control target
= control target key end

     0   :  { %s918_s9 = smov 0   ;;  %s920_s10 = smov 0   ;;  %s992_s0 = inlined_call_operand.vmem [shape: bf16[256,128], index: 0, kind: input, shape index: {}]   ;;  %s993_s1 = inlined_call_operand.vmem [shape: bf16[128,128], index: 1, kind: input, shape index: {}]   ;;  %s994_s2 = inlined_call_operand.vmem [shape: bf16[256,128], index: 2, kind: output, shape index: {}]  }
   0x1   :  { %s922_s11 = smov 0  }
   0x2 LB: > { %s24_s12 = sadd.s32 1, %s897_s10  ;;  %p673_p0 = scmp.ge.s32.totalorder %s901_s11, 1  ;;  %s901_s11 = sphi %s922_s11, %s12_s11   ;;  %s897_s10 = sphi %s920_s10, %s996_s10   ;;  %s893_s9 = sphi %s918_s9, %s995_s9  }
   0x3   : > { %p26_p1 = scmp.ge.s32.totalorder %s24_s12, 2  ;;  %p141_p2 = scmp.lt.s32.totalorder %s901_s11, 3 }
   0x5   : > { %s998_s12 = smov (%p26_p1, %s24_s12), 0  ;;  %p142_p3 = pnand %p673_p0, %p141_p2 }
   0x6   : > { %v863_v0 = vld [vmem:[%s993_s1] sm:$0xff] (!%p142_p3)   ;;  %s674_s15 = sshll.u32 (!%p142_p3), %s893_s9, 4  ;;  %v864_v1 = vld [vmem:[%s993_s1 + $0x8] sm:$0xff] (!%p142_p3)   ;;  %v865_v2 = vld [vmem:[%s993_s1 + $0x10] sm:$0xff] (!%p142_p3)  }
   0x7   : > { %145 = sbr.rel (%p142_p3) target bundleno = 265 (0x109), region = 28  ;;  %p172_p4 = scmp.lt.s32.totalorder (!%p142_p3), %s674_s15, 31  ;;  %791 = vmatprep.subr.bf16.mxu0 (!%p142_p3), %v863_v0  ;;  %823 = vmatprep.subr.bf16.mxu1 (!%p142_p3), %v863_v0  ;;  %v866_v3 = vld [vmem:[%s993_s1 + $0x18] sm:$0xff] (!%p142_p3)   ;;  %v867_v6 = vld [vmem:[%s993_s1 + $0x20] sm:$0xff] (!%p142_p3)   ;;  %v868_v7 = vld [vmem:[%s993_s1 + $0x28] sm:$0xff] (!%p142_p3)  }
   0x8   : > { %792 = vmatpush3.bf16.msra.mxu0 (!%p142_p3), %v863_v0  ;;  %831 = vmatpush3.bf16.msra.mxu1 (!%p142_p3), %v863_v0  ;;  %v869_v8 = vld [vmem:[%s993_s1 + $0x30] sm:$0xff] (!%p142_p3)   ;;  %v870_v9 = vld [vmem:[%s993_s1 + $0x38] sm:$0xff] (!%p142_p3)  }
   0x9   : > { %793 = vmatprep.subr.bf16.mxu0 (!%p142_p3), %v864_v1  ;;  %824 = vmatprep.subr.bf16.mxu1 (!%p142_p3), %v864_v1 }
   0xc   : > { %794 = vmatpush3.bf16.msra.mxu0 (!%p142_p3), %v864_v1  ;;  %832 = vmatpush3.bf16.msra.mxu1 (!%p142_p3), %v864_v1 }
   0xd   : > { %795 = vmatprep.subr.bf16.mxu0 (!%p142_p3), %v865_v2  ;;  %825 = vmatprep.subr.bf16.mxu1 (!%p142_p3), %v865_v2 }
   0xe   : > { %s1000_s15 = smov (!%p172_p4, %s674_s15), 31 }
   0xf   : > { %s675_s20 = sshll.u32 %s1000_s15, 2 }
  0x10   : > { %s953_s23 = scalar_lea.vmem %s992_s0, %s675_s20  ;;  %796 = vmatpush3.bf16.msra.mxu0 %v865_v2  ;;  %833 = vmatpush3.bf16.msra.mxu1 %v865_v2  ;;  %s190_s8 = scalar_lea.vmem %s994_s2, %s675_s20 }
  0x11   : > { %v871_v4 = vld [vmem:[%s953_s23] sm:$0xff]   ;;  %797 = vmatprep.subr.bf16.mxu0 %v866_v3  ;;  %826 = vmatprep.subr.bf16.mxu1 %v866_v3  ;;  %v873_v10 = vld [vmem:[%s953_s23 + $0x8] sm:$0xff]   ;;  %v875_v12 = vld [vmem:[%s953_s23 + $0x10] sm:$0xff]  }
  0x12   : > { %v872_v5 = vld [vmem:[%s953_s23 + $0x20] sm:$0xff]   ;;  %807 = vmatprep.mubr.bf16.mxu0 %v871_v4  ;;  %v874_v11 = vld [vmem:[%s953_s23 + $0x28] sm:$0xff]   ;;  %v876_v13 = vld [vmem:[%s953_s23 + $0x30] sm:$0xff]  }
  0x13   : > { %815 = vmatprep.mubr.bf16.mxu1 %v872_v5  ;;  %v877_v14 = vld [vmem:[%s953_s23 + $0x18] sm:$0xff]  }
  0x14   : > { %798 = vmatpush3.bf16.msra.mxu0 %v866_v3  ;;  %834 = vmatpush3.bf16.msra.mxu1 %v866_v3  ;;  %v878_v15 = vld [vmem:[%s953_s23 + $0x38] sm:$0xff]  }
  0x15   : > { %799 = vmatprep.subr.bf16.mxu0 %v867_v6  ;;  %827 = vmatprep.subr.bf16.mxu1 %v867_v6 }
  0x18   : > { %800 = vmatpush3.bf16.msra.mxu0 %v867_v6  ;;  %835 = vmatpush3.bf16.msra.mxu1 %v867_v6 }
  0x19   : > { %801 = vmatprep.subr.bf16.mxu0 %v868_v7  ;;  %828 = vmatprep.subr.bf16.mxu1 %v868_v7 }
  0x1c   : > { %802 = vmatpush3.bf16.msra.mxu0 %v868_v7  ;;  %836 = vmatpush3.bf16.msra.mxu1 %v868_v7 }
  0x1d   : > { %803 = vmatprep.subr.bf16.mxu0 %v869_v8  ;;  %829 = vmatprep.subr.bf16.mxu1 %v869_v8 }
  0x20   : > { %804 = vmatpush3.bf16.msra.mxu0 %v869_v8  ;;  %837 = vmatpush3.bf16.msra.mxu1 %v869_v8 }
  0x21   : > { %805 = vmatprep.subr.bf16.mxu0 %v870_v9  ;;  %830 = vmatprep.subr.bf16.mxu1 %v870_v9 }
  0x24   : > { %806 = vmatpush3.bf16.msra.mxu0 %v870_v9  ;;  %838 = vmatpush3.bf16.msra.mxu1 %v870_v9 }
  0x27   : > { %808 = vmatmul.mubr.bf16.vlgmr.msra.gmra.mrb[0].mxu0 %v873_v10  ;;  %816 = vmatmul.mubr.bf16.vlgmr.msra.gmra.mrb[0].mxu1 %v874_v11 }
  0x28   : > { %811 = vmatprep.mubr.bf16.mxu0 %v875_v12  ;;  %819 = vmatprep.mubr.bf16.mxu1 %v876_v13 }
  0x2f   : > { %812 = vmatmul.mubr.bf16.gmra.mrb[4].mxu0 %v877_v14  ;;  %820 = vmatmul.mubr.bf16.gmra.mrb[4].mxu1 %v878_v15 }
  0xfa   : > { %v809_v16 = vpop.f32.mrb[0].mxu0  ;;  %v817_v17 = vpop.f32.mrb[0].mxu1 }
  0xfb   : > { %v391_v18 = vpop.f32.mrb[1].mxu0  ;;  %v423_v19 = vpop.f32.mrb[1].mxu1 }
  0xfc   : > { %v810_v20 = vpop.f32.mrb[2].mxu0  ;;  %v818_v21 = vpop.f32.mrb[2].mxu1 }
  0xfd   : > { %v736_v22 = vpack.c.bf16 %v810_v20, %v809_v16  ;;  %v756_v23 = vpack.c.bf16 %v818_v21, %v817_v17  ;;  %v394_v24 = vpop.f32.mrb[3].mxu0  ;;  %v426_v25 = vpop.f32.mrb[3].mxu1 }
  0xfe   : > { %v731_v26 = vpack.c.bf16 %v394_v24, %v391_v18  ;;  %v751_v27 = vpack.c.bf16 %v426_v25, %v423_v19 }
  0xff   : > { %768 = vst [vmem:[%s190_s8 + $0x8] sm:$0xff] %v736_v22   ;;  %772 = vst [vmem:[%s190_s8 + $0x28] sm:$0xff] %v756_v23  }
 0x100   : > { %732 = vst [vmem:[%s190_s8] sm:$0xff] %v731_v26   ;;  %771 = vst [vmem:[%s190_s8 + $0x20] sm:$0xff] %v751_v27  }
 0x102   : > { %v813_v28 = vpop.f32.mrb[4].mxu0  ;;  %v821_v29 = vpop.f32.mrb[4].mxu1 }
 0x103   : > { %v407_v30 = vpop.f32.mrb[5].mxu0  ;;  %v439_v31 = vpop.f32.mrb[5].mxu1 }
 0x104   : > { %v814_v32 = vpop.f32.mrb[6].mxu0  ;;  %v822_v33 = vpop.f32.mrb[6].mxu1 }
 0x105   : > { %v746_v34 = vpack.c.bf16 %v814_v32, %v813_v28  ;;  %v766_v35 = vpack.c.bf16 %v822_v33, %v821_v29  ;;  %v410_v36 = vpop.f32.mrb[7].mxu0  ;;  %v442_v37 = vpop.f32.mrb[7].mxu1 }
 0x106   : > { %v741_v38 = vpack.c.bf16 %v410_v36, %v407_v30  ;;  %v761_v39 = vpack.c.bf16 %v442_v37, %v439_v31 }
 0x107   : > { %770 = vst [vmem:[%s190_s8 + $0x18] sm:$0xff] %v746_v34   ;;  %774 = vst [vmem:[%s190_s8 + $0x38] sm:$0xff] %v766_v35  }
 0x108   : > { %769 = vst [vmem:[%s190_s8 + $0x10] sm:$0xff] %v741_v38   ;;  %773 = vst [vmem:[%s190_s8 + $0x30] sm:$0xff] %v761_v39  }
 0x109 PF: > { %s12_s11 = sadd.s32 1, %s901_s11   ;;  %s995_s9 = smov %s897_s10 }
 0x10a   : > { %p9_p5 = scmp.ge.s32.totalorder %s12_s11, 4   ;;  %s996_s10 = smov %s998_s12 }
 0x10c   :  { %11 = sbr.rel (!%p9_p5) target bundleno = 2 (0x2), region = 69 }

// kernel: _subgraph_forward.3
= control target key start
LH: loop header
LB: loop body
LE: loop exit
PB: predicated region body
PF: predicated region fallthrough
CT: control target
= control target key end

     0   :  { %s1351_s18 = smov 0   ;;  %s1353_s19 = smov 0   ;;  %s1505_s0 = inlined_call_operand.vmem [shape: bf16[256,256], index: 0, kind: input, shape index: {}]   ;;  %s1506_s1 = inlined_call_operand.vmem [shape: bf16[256,128], index: 1, kind: input, shape index: {}]   ;;  %s1507_s2 = inlined_call_operand.vmem [shape: f32[1,128], index: 2, kind: input, shape index: {}]   ;;  %s1508_s3 = inlined_call_operand.vmem [shape: bf16[8,256], index: 3, kind: input, shape index: {}]   ;;  %s1509_s4 = inlined_call_operand.vmem [shape: bf16[256,128], index: 4, kind: output, shape index: {0}]   ;;  %s1510_s5 = inlined_call_operand.vmem [shape: f32[2,8,128], index: 5, kind: output, shape index: {1}]  }
   0x1   :  { %s1355_s20 = smov 0  }
   0x2 LB: > { %s28_s21 = sadd.s32 1, %s1313_s19  ;;  %p1013_p0 = scmp.ge.s32.totalorder %s1317_s20, 1  ;;  %s1317_s20 = sphi %s1355_s20, %s16_s20   ;;  %s1313_s19 = sphi %s1353_s19, %s1512_s19   ;;  %s1309_s18 = sphi %s1351_s18, %s1511_s18  }
   0x3   : > { %p30_p1 = scmp.ge.s32.totalorder %s28_s21, 2  ;;  %p231_p2 = scmp.lt.s32.totalorder %s1317_s20, 3 }
   0x5   : > { %s1514_s21 = smov (%p30_p1, %s28_s21), 0  ;;  %p232_p3 = pnand %p1013_p0, %p231_p2 }
   0x6   : > { %v1255_v0 = vld [vmem:[%s1506_s1 + $0x40] sm:$0xff] (!%p232_p3)   ;;  %s1014_s24 = sshll.u32 (!%p232_p3), %s1309_s18, 4  ;;  %v1257_v2 = vld [vmem:[%s1506_s1 + $0x48] sm:$0xff] (!%p232_p3)   ;;  %v1259_v4 = vld [vmem:[%s1506_s1 + $0x50] sm:$0xff] (!%p232_p3)   ;;  %v1319_v32 = vmov (!%p232_p3), 0.0   ;;  %vm1320_vm0 = vmmov (!%p232_p3), 0  }
   0x7   : > { %235 = sbr.rel (%p232_p3) target bundleno = 536 (0x218), region = 36  ;;  %v1256_v1 = vld [vmem:[%s1506_s1] sm:$0xff] (!%p232_p3)   ;;  %1136 = vmatprep.subr.bf16.mxu0 (!%p232_p3), %v1255_v0  ;;  %v1258_v3 = vld [vmem:[%s1506_s1 + $0x8] sm:$0xff] (!%p232_p3)   ;;  %p279_p4 = scmp.lt.s32.totalorder (!%p232_p3), %s1014_s24, 31  ;;  %v1260_v5 = vld [vmem:[%s1506_s1 + $0x10] sm:$0xff] (!%p232_p3)   ;;  %1209 = vmatprep.subr.bf16.mxu1 (!%p232_p3), %v1319_v32 }
   0x8   : > { %1137 = vmatpush3.bf16.msra.mxu0 (!%p232_p3), %v1256_v1  ;;  %v1261_v6 = vld [vmem:[%s1506_s1 + $0x58] sm:$0xff] (!%p232_p3)   ;;  %v1263_v8 = vld [vmem:[%s1506_s1 + $0x60] sm:$0xff] (!%p232_p3)   ;;  %v1265_v10 = vld [vmem:[%s1506_s1 + $0x68] sm:$0xff] (!%p232_p3)   ;;  %1225 = vmatprep.mubr.msk.bf16.mxu1 (!%p232_p3), %vm1320_vm0, %v1319_v32  ;;  %p295_p5 = scmp.lt.s32.totalorder (!%p232_p3), %s1309_s18, 1 }
   0x9   : > { %1138 = vmatprep.subr.bf16.mxu0 (!%p232_p3), %v1257_v2  ;;  %v1262_v7 = vld [vmem:[%s1506_s1 + $0x18] sm:$0xff] (!%p232_p3)   ;;  %v1264_v9 = vld [vmem:[%s1506_s1 + $0x20] sm:$0xff] (!%p232_p3)   ;;  %v1266_v12 = vld [vmem:[%s1506_s1 + $0x28] sm:$0xff] (!%p232_p3)  }
   0xa   : > { %v1267_v13 = vld [vmem:[%s1506_s1 + $0x70] sm:$0xff] (!%p232_p3)   ;;  %v1269_v15 = vld [vmem:[%s1506_s1 + $0x78] sm:$0xff] (!%p232_p3)   ;;  %v1449_v35 = vld [vmem:[%s1507_s2] ss:$0 sm:$0xff] (!%p232_p3) }
   0xb   : > { %v1268_v14 = vld [vmem:[%s1506_s1 + $0x30] sm:$0xff] (!%p232_p3)   ;;  %v1270_v16 = vld [vmem:[%s1506_s1 + $0x38] sm:$0xff] (!%p232_p3)  }
   0xc   : > { %1139 = vmatpush3.bf16.msra.mxu0 (!%p232_p3), %v1258_v3 }
   0xd   : > { %1140 = vmatprep.subr.bf16.mxu0 (!%p232_p3), %v1259_v4 }
   0xe   : > { %s1516_s24 = smov (!%p279_p4, %s1014_s24), 31  ;;  %s1518_s18 = smov (!%p295_p5, %s1309_s18), 1 }
   0xf   : > { %s1072_s14 = sshll.u32 %s1516_s24, 3  ;;  %s1019_s16 = sshll.u32 %s1516_s24, 2 }
  0x10   : > { %1141 = vmatpush3.bf16.msra.mxu0 %v1260_v5  ;;  %s1405_s23 = scalar_lea.vmem %s1505_s0, %s1072_s14  ;;  %s1017_s24 = sshll.u32 %s1518_s18, 2 }
  0x11   : > { %1142 = vmatprep.subr.bf16.mxu0 %v1261_v6  ;;  %v1273_v11 = vld [vmem:[%s1405_s23 + $0x4] ss:$8 sps:$4 sm:$0xff]   ;;  %v1271_v17 = vld [vmem:[%s1405_s23] ss:$8 sps:$4 sm:$0xff]   ;;  %v1274_v18 = vld [vmem:[%s1405_s23 + $0x14] ss:$8 sps:$4 sm:$0xff]   ;;  %s298_s27 = scalar_lea.vmem %s1508_s3, %s1017_s24 }
  0x12   : > { %602 = vmatprep.mubr.bf16.mxu0 %v1273_v11  ;;  %v1276_v19 = vld [vmem:[%s1405_s23 + $0x10] ss:$8 sps:$4 sm:$0xff]   ;;  %v1277_v20 = vld [vmem:[%s1405_s23 + $0x24] ss:$8 sps:$4 sm:$0xff]   ;;  %v1279_v21 = vld [vmem:[%s1405_s23 + $0x20] ss:$8 sps:$4 sm:$0xff]  }
  0x13   : > { %v1280_v22 = vld [vmem:[%s1405_s23 + $0x34] ss:$8 sps:$4 sm:$0xff]   ;;  %v1282_v23 = vld [vmem:[%s1405_s23 + $0x30] ss:$8 sps:$4 sm:$0xff]   ;;  %v1283_v24 = vld [vmem:[%s1405_s23 + $0x44] ss:$8 sps:$4 sm:$0xff]  }
  0x14   : > { %1143 = vmatpush3.bf16.msra.mxu0 %v1262_v7  ;;  %v1285_v25 = vld [vmem:[%s1405_s23 + $0x40] ss:$8 sps:$4 sm:$0xff]   ;;  %v1286_v26 = vld [vmem:[%s1405_s23 + $0x54] ss:$8 sps:$4 sm:$0xff]   ;;  %v1288_v27 = vld [vmem:[%s1405_s23 + $0x50] ss:$8 sps:$4 sm:$0xff]  }
  0x15   : > { %1144 = vmatprep.subr.bf16.mxu0 %v1263_v8  ;;  %v1289_v28 = vld [vmem:[%s1405_s23 + $0x64] ss:$8 sps:$4 sm:$0xff]   ;;  %v1291_v29 = vld [vmem:[%s1405_s23 + $0x60] ss:$8 sps:$4 sm:$0xff]   ;;  %v1292_v30 = vld [vmem:[%s1405_s23 + $0x74] ss:$8 sps:$4 sm:$0xff]  }
  0x16   : > { %v1294_v31 = vld [vmem:[%s1405_s23 + $0x70] ss:$8 sps:$4 sm:$0xff]   ;;  %s1457_s23 = scalar_lea.vmem %s1509_s4, %s1019_s16  ;;  %s1020_s28 = sshll.u32 %s1518_s18, 3 }
  0x17   : > { %s308_s6 = scalar_lea.vmem %s1510_s5, %s1020_s28 }
  0x18   : > { %1145 = vmatpush3.bf16.msra.mxu0 %v1264_v9 }
  0x19   : > { %1146 = vmatprep.subr.bf16.mxu0 %v1265_v10 }
  0x1c   : > { %1147 = vmatpush3.bf16.msra.mxu0 %v1266_v12 }
  0x1d   : > { %1148 = vmatprep.subr.bf16.mxu0 %v1267_v13 }
  0x20   : > { %1149 = vmatpush3.bf16.msra.mxu0 %v1268_v14 }
  0x21   : > { %1150 = vmatprep.subr.bf16.mxu0 %v1269_v15 }
  0x24   : > { %1151 = vmatpush3.bf16.msra.mxu0 %v1270_v16 }
  0x27   : > { %603 = vmatmul.mubr.bf16.vlgmr.msra.gmra.mrb[0].mxu0 %v1271_v17 }
  0x28   : > { %610 = vmatprep.mubr.bf16.mxu0 %v1274_v18 }
  0x2f   : > { %611 = vmatmul.mubr.bf16.gmra.mrb[4].mxu0 %v1276_v19 }
  0x30   : > { %618 = vmatprep.mubr.bf16.mxu0 %v1277_v20 }
  0x37   : > { %619 = vmatmul.mubr.bf16.gmra.mrb[8].mxu0 %v1279_v21 }
  0x38   : > { %626 = vmatprep.mubr.bf16.mxu0 %v1280_v22 }
  0x3f   : > { %627 = vmatmul.mubr.bf16.gmra.mrb[12].mxu0 %v1282_v23 }
  0x40   : > { %634 = vmatprep.mubr.bf16.mxu0 %v1283_v24 }
  0x47   : > { %635 = vmatmul.mubr.bf16.gmra.mrb[16].mxu0 %v1285_v25 }
  0x48   : > { %642 = vmatprep.mubr.bf16.mxu0 %v1286_v26 }
  0x4f   : > { %643 = vmatmul.mubr.bf16.gmra.mrb[20].mxu0 %v1288_v27 }
  0x50   : > { %650 = vmatprep.mubr.bf16.mxu0 %v1289_v28 }
  0x57   : > { %651 = vmatmul.mubr.bf16.gmra.mrb[24].mxu0 %v1291_v29 }
  0x58   : > { %658 = vmatprep.mubr.bf16.mxu0 %v1292_v30 }
  0x5f   : > { %659 = vmatmul.mubr.bf16.gmra.mrb[28].mxu0 %v1294_v31 }
  0xfa   : > { %v1152_v33 = vpop.f32.mrb[0].mxu0 }
  0xfb   : > { %v1153_v34 = vpop.f32.mrb[1].mxu0 }
  0xfc   : > { %v1154_v36 = vadd.f32 %v1153_v34, %v1152_v33  ;;  %v1155_v37 = vpop.f32.mrb[2].mxu0 }
  0xfd   : > { %v1156_v38 = vpop.f32.mrb[3].mxu0 }
  0xfe   : > { %v725_v39 = vadd.f32 %v1154_v36, %v1449_v35  ;;  %v1157_v40 = vadd.f32 %v1156_v38, %v1155_v37 }
 0x100   : > { %v726_v41 = vadd.f32 %v1157_v40, %v1449_v35  ;;  %v741_v42 = vmax.f32 %v725_v39, 0.0 }
 0x102   : > { %v742_v43 = vmax.f32 %v726_v41, 0.0  ;;  %v1158_v44 = vpop.f32.mrb[4].mxu0 }
 0x103   : > { %v1159_v45 = vpop.f32.mrb[5].mxu0 }
 0x104   : > { %v1160_v46 = vadd.f32 %v1159_v45, %v1158_v44  ;;  %v1161_v47 = vpop.f32.mrb[6].mxu0  ;;  %v757_v48 = vpack.c.bf16 %v742_v43, %v741_v42 }
 0x105   : > { %v1162_v49 = vpop.f32.mrb[7].mxu0 }
 0x106   : > { %v727_v50 = vadd.f32 %v1160_v46, %v1449_v35  ;;  %v1163_v51 = vadd.f32 %v1162_v49, %v1161_v47  ;;  %1093 = vst [vmem:[%s1457_s23] sm:$0xff] %v757_v48   ;;  %1210 = vmatpush3.bf16.msra.mxu1 %v757_v48 }
 0x107   : > { %1211 = vmatprep.subr.bf16.mxu1 %v1319_v32 }
 0x108   : > { %v728_v52 = vadd.f32 %v1163_v51, %v1449_v35  ;;  %v743_v53 = vmax.f32 %v727_v50, 0.0 }
 0x10a   : > { %v744_v54 = vmax.f32 %v728_v52, 0.0  ;;  %v1164_v55 = vpop.f32.mrb[8].mxu0 }
 0x10b   : > { %v1165_v56 = vpop.f32.mrb[9].mxu0 }
 0x10c   : > { %v1166_v57 = vadd.f32 %v1165_v56, %v1164_v55  ;;  %v1167_v58 = vpop.f32.mrb[10].mxu0  ;;  %v758_v59 = vpack.c.bf16 %v744_v54, %v743_v53 }
 0x10d   : > { %v1168_v60 = vpop.f32.mrb[11].mxu0 }
 0x10e   : > { %v729_v61 = vadd.f32 %v1166_v57, %v1449_v35  ;;  %v1169_v62 = vadd.f32 %v1168_v60, %v1167_v58  ;;  %1129 = vst [vmem:[%s1457_s23 + $0x8] sm:$0xff] %v758_v59   ;;  %1212 = vmatpush3.bf16.msra.mxu1 %v758_v59  ;;  %v837_v60 = vld [vmem:[%s298_s27] sm:$0xf] }
 0x10f   : > { %1213 = vmatprep.subr.bf16.mxu1 %v1319_v32 }
 0x110   : > { %v730_v63 = vadd.f32 %v1169_v62, %v1449_v35  ;;  %v745_v0 = vmax.f32 %v729_v61, 0.0 }
 0x112   : > { %v746_v1 = vmax.f32 %v730_v63, 0.0  ;;  %v1170_v2 = vpop.f32.mrb[12].mxu0 }
 0x113   : > { %v1171_v3 = vpop.f32.mrb[13].mxu0 }
 0x114   : > { %v1172_v4 = vadd.f32 %v1171_v3, %v1170_v2  ;;  %v1173_v5 = vpop.f32.mrb[14].mxu0  ;;  %v759_v6 = vpack.c.bf16 %v746_v1, %v745_v0 }
 0x115   : > { %v1174_v7 = vpop.f32.mrb[15].mxu0 }
 0x116   : > { %v731_v8 = vadd.f32 %v1172_v4, %v1449_v35  ;;  %v1175_v9 = vadd.f32 %v1174_v7, %v1173_v5  ;;  %1130 = vst [vmem:[%s1457_s23 + $0x10] sm:$0xff] %v759_v6   ;;  %1214 = vmatpush3.bf16.msra.mxu1 %v759_v6 }
 0x117   : > { %1215 = vmatprep.subr.bf16.mxu1 %v1319_v32 }
 0x118   : > { %v732_v10 = vadd.f32 %v1175_v9, %v1449_v35  ;;  %v747_v11 = vmax.f32 %v731_v8, 0.0 }
 0x11a   : > { %v748_v12 = vmax.f32 %v732_v10, 0.0  ;;  %v1176_v13 = vpop.f32.mrb[16].mxu0 }
 0x11b   : > { %v1177_v14 = vpop.f32.mrb[17].mxu0 }
 0x11c   : > { %v1178_v15 = vadd.f32 %v1177_v14, %v1176_v13  ;;  %v1179_v16 = vpop.f32.mrb[18].mxu0  ;;  %v760_v17 = vpack.c.bf16 %v748_v12, %v747_v11 }
 0x11d   : > { %v1180_v18 = vpop.f32.mrb[19].mxu0 }
 0x11e   : > { %v733_v19 = vadd.f32 %v1178_v15, %v1449_v35  ;;  %v1181_v20 = vadd.f32 %v1180_v18, %v1179_v16  ;;  %1131 = vst [vmem:[%s1457_s23 + $0x18] sm:$0xff] %v760_v17   ;;  %1216 = vmatpush3.bf16.msra.mxu1 %v760_v17 }
 0x11f   : > { %1217 = vmatprep.subr.bf16.mxu1 %v1319_v32 }
 0x120   : > { %v734_v21 = vadd.f32 %v1181_v20, %v1449_v35  ;;  %v749_v22 = vmax.f32 %v733_v19, 0.0 }
 0x122   : > { %v750_v23 = vmax.f32 %v734_v21, 0.0  ;;  %v1182_v24 = vpop.f32.mrb[20].mxu0 }
 0x123   : > { %v1183_v25 = vpop.f32.mrb[21].mxu0 }
 0x124   : > { %v1184_v26 = vadd.f32 %v1183_v25, %v1182_v24  ;;  %v1185_v27 = vpop.f32.mrb[22].mxu0  ;;  %v761_v28 = vpack.c.bf16 %v750_v23, %v749_v22 }
 0x125   : > { %v1186_v29 = vpop.f32.mrb[23].mxu0 }
 0x126   : > { %v735_v30 = vadd.f32 %v1184_v26, %v1449_v35  ;;  %v1187_v31 = vadd.f32 %v1186_v29, %v1185_v27  ;;  %1132 = vst [vmem:[%s1457_s23 + $0x20] sm:$0xff] %v761_v28   ;;  %1218 = vmatpush3.bf16.msra.mxu1 %v761_v28 }
 0x127   : > { %1219 = vmatprep.subr.bf16.mxu1 %v1319_v32 }
 0x128   : > { %v736_v33 = vadd.f32 %v1187_v31, %v1449_v35  ;;  %v751_v34 = vmax.f32 %v735_v30, 0.0 }
 0x12a   : > { %v752_v36 = vmax.f32 %v736_v33, 0.0  ;;  %v1188_v37 = vpop.f32.mrb[24].mxu0 }
 0x12b   : > { %v1189_v38 = vpop.f32.mrb[25].mxu0 }
 0x12c   : > { %v1190_v39 = vadd.f32 %v1189_v38, %v1188_v37  ;;  %v1191_v40 = vpop.f32.mrb[26].mxu0  ;;  %v762_v41 = vpack.c.bf16 %v752_v36, %v751_v34 }
 0x12d   : > { %v1192_v42 = vpop.f32.mrb[27].mxu0 }
 0x12e   : > { %v737_v43 = vadd.f32 %v1190_v39, %v1449_v35  ;;  %v1193_v44 = vadd.f32 %v1192_v42, %v1191_v40  ;;  %1133 = vst [vmem:[%s1457_s23 + $0x28] sm:$0xff] %v762_v41   ;;  %1220 = vmatpush3.bf16.msra.mxu1 %v762_v41 }
 0x12f   : > { %1221 = vmatprep.subr.bf16.mxu1 %v1319_v32 }
 0x130   : > { %v738_v45 = vadd.f32 %v1193_v44, %v1449_v35  ;;  %v753_v46 = vmax.f32 %v737_v43, 0.0 }
 0x132   : > { %v754_v47 = vmax.f32 %v738_v45, 0.0  ;;  %v1194_v48 = vpop.f32.mrb[28].mxu0 }
 0x133   : > { %v1195_v49 = vpop.f32.mrb[29].mxu0 }
 0x134   : > { %v1196_v50 = vadd.f32 %v1195_v49, %v1194_v48  ;;  %v1197_v51 = vpop.f32.mrb[30].mxu0  ;;  %v763_v52 = vpack.c.bf16 %v754_v47, %v753_v46 }
 0x135   : > { %v1198_v53 = vpop.f32.mrb[31].mxu0 }
 0x136   : > { %v739_v54 = vadd.f32 %v1196_v50, %v1449_v35  ;;  %v1199_v55 = vadd.f32 %v1198_v53, %v1197_v51  ;;  %1134 = vst [vmem:[%s1457_s23 + $0x30] sm:$0xff] %v763_v52   ;;  %1222 = vmatpush3.bf16.msra.mxu1 %v763_v52 }
 0x137   : > { %1223 = vmatprep.subr.bf16.mxu1 %v1319_v32 }
 0x138   : > { %v740_v56 = vadd.f32 %v1199_v55, %v1449_v35  ;;  %v755_v57 = vmax.f32 %v739_v54, 0.0 }
 0x13a   : > { %v756_v58 = vmax.f32 %v740_v56, 0.0 }
 0x13c   : > { %v764_v59 = vpack.c.bf16 %v756_v58, %v755_v57 }
 0x13e   : > { %1135 = vst [vmem:[%s1457_s23 + $0x38] sm:$0xff] %v764_v59   ;;  %1224 = vmatpush3.bf16.msra.mxu1 %v764_v59 }
 0x141   : > { %1226 = vmatmul.mubr.bf16.vlgmr.msra.gmra.mrb[0].mxu1 %v837_v60 }
 0x214   : > { %v872_v32 = vpop.f32.mrb[0].mxu1 }
 0x215   : > { %878 = vst [vmem:[%s308_s6] sm:$0xff] %v872_v32  ;;  %v1227_v35 = vpop.f32.mrb[1].mxu1 }
 0x216   : > { %v875_v61 = vpop.f32.mrb[2].mxu1 }
 0x217   : > { %v1228_v62 = vpop.f32.mrb[3].mxu1 }
 0x218 PF: > { %s16_s20 = sadd.s32 1, %s1317_s20   ;;  %s1511_s18 = smov %s1313_s19 }
 0x219   : > { %p13_p6 = scmp.ge.s32.totalorder %s16_s20, 4   ;;  %s1512_s19 = smov %s1514_s21 }
 0x21b   :  { %15 = sbr.rel (!%p13_p6) target bundleno = 2 (0x2), region = 92 }

</bundles_post_ra>
